<compile_context>
chip_gen: v5e
topology: v5e:2x2
jax: 0.10.0
libtpu: 0.0.40
codegen_flags: <defaults>
</compile_context>

<pallas_src>
import jax
import jax.numpy as jnp
from jax.experimental import pallas as pl
from jax.experimental.pallas import tpu as pltpu


# ---------------------------------------------------------------------------
# Fast path (what UserModule.forward uses): index is statically 0 and the
# table has exactly one row, so the lookup is a whole-ref copy.
# ---------------------------------------------------------------------------
def _copy_table_kernel(emb_ref, out_ref):
    # Plain vld/vst: no SMEM scalar load, no dynamic sublane addressing.
    out_ref[...] = emb_ref[...]


def embedding_identity_lookup(emb_table: jax.Array) -> jax.Array:
    """Return the (num_embeddings, D) table as the gather result.

    Valid exactly when the requested indices are [0, 1, ..., n-1] — for
    UserModule that is the single constant index 0 on a one-row table.
    """
    return pl.pallas_call(
        _copy_table_kernel,
        out_shape=jax.ShapeDtypeStruct(emb_table.shape, emb_table.dtype),
        # Grid-less: whole (tiny) arrays mapped straight into VMEM, zero
        # pipeline / per-step overhead.
        in_specs=[pl.BlockSpec(memory_space=pltpu.MemorySpace.VMEM)],
        out_specs=pl.BlockSpec(memory_space=pltpu.MemorySpace.VMEM),
        # Output aliases the same-shaped/same-dtype input table: no separate
        # output allocation or extra HBM writeback for this 128-byte op.
        input_output_aliases={0: 0},
    )(emb_table)


# ---------------------------------------------------------------------------
# General dynamic-index gather — kept for the multi-row / multi-user case.
# Not used by UserModule.forward (its index is statically 0).
# ---------------------------------------------------------------------------
def _embedding_lookup_kernel(idx_ref, emb_ref, out_ref):
    """idx_ref: (n,) int32 in SMEM; emb_ref: (R, D) VMEM; out_ref: (n, D) VMEM."""
    n = out_ref.shape[0]
    num_rows = emb_ref.shape[0]
    # n is tiny here; a static Python loop unrolls fully.
    for r in range(n):
        # Clamp to guard against silent OOB VMEM reads on bad indices.
        row = jnp.clip(idx_ref[r], 0, num_rows - 1)
        out_ref[pl.ds(r, 1), :] = emb_ref[pl.ds(row, 1), :]


def embedding_lookup(emb_table: jax.Array, indices: jax.Array) -> jax.Array:
    """Gather rows `indices` from `emb_table` with a single grid-less kernel."""
    n = indices.shape[0]
    latent_dim = emb_table.shape[1]
    return pl.pallas_call(
        _embedding_lookup_kernel,
        out_shape=jax.ShapeDtypeStruct((n, latent_dim), emb_table.dtype),
        in_specs=[
            pl.BlockSpec(memory_space=pltpu.MemorySpace.SMEM),  # indices
            pl.BlockSpec(memory_space=pltpu.MemorySpace.VMEM),  # table
        ],
        out_specs=pl.BlockSpec(memory_space=pltpu.MemorySpace.VMEM),
    )(indices.astype(jnp.int32), emb_table)


class UserModule:
    """JAX/Pallas port of the PyTorch UserModule."""

    def __init__(self, configs, key):
        self.configs = configs
        latent_dim = configs["latent_dim"]
        # torch.rand((1, latent_dim)) -> uniform [0, 1)
        self.user_emb_weight = jax.random.uniform(
            key, (1, latent_dim), dtype=jnp.float32
        )
        # One compiled executable for the whole forward; if embedded in a
        # larger model, call _forward_impl directly so it fuses there instead.
        self._forward_jit = jax.jit(UserModule._forward_impl)

    @staticmethod
    def _forward_impl(weight):
        # torch: user_index = LongTensor([0]); user_emb(user_index)
        # num_embeddings == 1 and the index is statically 0, so the gather is
        # exactly a copy of the one-row table.
        return embedding_identity_lookup(weight)

    def forward(self):
        return self._forward_jit(self.user_emb_weight)


if __name__ == "__main__":
    key = jax.random.PRNGKey(0)
    configs = {"latent_dim": 32, "device": None}

    module = UserModule(configs, key)
    out = jax.block_until_ready(module.forward())

    # Sanity check against plain-JAX reference (a simple row gather).
    ref = module.user_emb_weight[jnp.array([0])]
    assert out.shape == (1, configs["latent_dim"]), out.shape
    assert jnp.allclose(out, ref), "mismatch vs reference gather"

    # Also exercise the general (multi-row, dynamic-index) gather path.
    table = jax.random.uniform(jax.random.PRNGKey(1), (8, 32), dtype=jnp.float32)
    idx = jnp.array([3, 0, 7, 3], dtype=jnp.int32)
    got = jax.block_until_ready(embedding_lookup(table, idx))
    assert got.shape == (4, 32), got.shape
    assert jnp.allclose(got, table[idx]), "mismatch vs reference batched gather"

    print("KERNEL_OK")
</pallas_src>

<mosaic_0001>
module attributes {stable_mosaic.version = 11 : i64} {
  func.func @_copy_table_kernel(%arg0: memref<1x32xf32, #tpu.memory_space<vmem>>, %arg1: memref<1x32xf32, #tpu.memory_space<vmem>>) attributes {dimension_semantics = [], scalar_prefetch = 0 : i64, scratch_operands = 0 : i64, tpu.core_type = #tpu.core_type<tc>} {
    %c0 = arith.constant 0 : index
    %c0_0 = arith.constant 0 : index
    %0 = vector.load %arg0[%c0, %c0_0] : memref<1x32xf32, #tpu.memory_space<vmem>>, vector<1x32xf32>
    %c0_1 = arith.constant 0 : index
    %c0_2 = arith.constant 0 : index
    %1 = vector.load %arg1[%c0_1, %c0_2] : memref<1x32xf32, #tpu.memory_space<vmem>>, vector<1x32xf32>
    tpu.vector_store %arg1[%c0_1, %c0_2], %0 {strides = array<i32>} : memref<1x32xf32, #tpu.memory_space<vmem>>, vector<1x32xf32>,
    return
  }
}

</mosaic_0001>

<bundles_post_ra>
// kernel: _forward_impl.1
= control target key start
LH: loop header
LB: loop body
LE: loop exit
PB: predicated region body
PF: predicated region fallthrough
CT: control target
= control target key end

     0   :  { %6 = vsyncpa [#allocation3], 0  ;;  %s115_s0 = inlined_call_operand.hbm [shape: f32[1,32], index: 0, kind: input, shape index: {}, may-alias: {0,1}]   ;;  %s116_s1 = inlined_call_operand.hbm [shape: f32[1,32], index: 1, kind: output, shape index: {}, may-alias: {0,1}]  }
   0x1   :  { %7 = vsyncpa [#allocation4], 0  ;;  %s13_s8 = sshll.u32 %s115_s0, 4  ;;  %s97_s9 = smov [#allocation2]   ;;  %s14_s8 = int_to_ptr.hbm [resolvable:$true] %s13_s8 }
   0x2   :  { %s15_s10 = sshll.u32 %s97_s9, 4  ;;  %s16_s10 = int_to_ptr.vmem [resolvable:$true] %s15_s10 }
   0x3   :  { %18 = dma.hbm_to_vmem [thread:$0]  %s14_s8, 16, %s16_s10, [#allocation3]  }
   0x4   :  { %93 = dma.done.wait [#allocation3], 16  }
   0x5   :  { %94 = vsyncadd [#allocation3], 4294967280  ;;  %s98_s11 = smov [#allocation5]   ;;  %s33_s15 = sshll.u32 %s116_s1, 4  ;;  %vm24_vm0 = vcmask 253952   ;;  %s34_s15 = int_to_ptr.hbm [resolvable:$true] %s33_s15 }
   0x6   :  { %s31_s12 = sshll.u32 %s98_s11, 4  ;;  %v23_v0 = vld [vmem:[#allocation2] sm:$0x1]  ;;  %s32_s12 = int_to_ptr.vmem [resolvable:$true] %s31_s12 }
   0x7   :  { %25 = vst.msk [vmem:[#allocation5] sm:$0x1] %vm24_vm0, %v23_v0 }
   0x8   :  { %36 = dma.vmem_to_hbm [thread:$0]  %s32_s12, 16, %s34_s15, [#allocation4]  }
   0x9   :  { %95 = dma.done.wait [#allocation4], 16  }
   0xa   :  { %96 = vsyncadd [#allocation4], 4294967280 }
   0xb   :  { %41 = vsyncpa [#allocation3], 1 }
   0xc   :  { %42 = vsyncpa [#allocation4], 1 }

</bundles_post_ra>
